<compile_context>
chip_gen: v7x
topology: tpu7x:2x2x1
jax: 0.10.0
libtpu: 0.0.40
codegen_flags: <defaults>
</compile_context>

<pallas_src>
import functools

import jax
import jax.numpy as jnp
import numpy as np
from jax.experimental import pallas as pl
from jax.experimental.pallas import tpu as pltpu


# ---------------------------------------------------------------------------
# Model configuration (small, consistent with ModelArgs)
# ---------------------------------------------------------------------------
DIM = 32
N_HEADS = 4
N_KV_HEADS = 2
HEAD_DIM = 8            # n_heads * head_dim == dim
HIDDEN_DIM = 64
SLIDING_WINDOW = 4
NORM_EPS = 1e-5
SEQ = 8                 # seqlen_sum

REPEATS = N_HEADS // N_KV_HEADS
Q_DIM = N_HEADS * HEAD_DIM        # 32
KV_DIM = N_KV_HEADS * HEAD_DIM    # 16
QKV_W = Q_DIM + 2 * KV_DIM        # 64  (q | k | v)


def _vmem():
    return pl.BlockSpec(memory_space=pltpu.MemorySpace.VMEM)


# ---------------------------------------------------------------------------
# Fused TransformerBlock kernel
# ---------------------------------------------------------------------------
def _fused_block_kernel(x_ref, ga_ref, gf_ref, wqkv_ref, cos_ref, sin_ref,
                        wo_ref, w13_ref, w2_ref, o_ref, *, eps, scale, window):
    x = x_ref[...]                                          # (S, D) f32
    s = x.shape[0]

    # ---- attention RMSNorm ------------------------------------------------
    ms = jnp.mean(x * x, axis=-1, keepdims=True)
    xn = x * jax.lax.rsqrt(ms + eps) * ga_ref[...]

    # ---- fused QKV projection (lane-dense 128-wide single MXU matmul) -----
    # columns: [ q(32) | k(16) | v(16) | q@P(32) | k@P(16) | zero-pad(16) ]
    qkv = jnp.dot(xn, wqkv_ref[...], preferred_element_type=jnp.float32)

    # ---- RoPE as elementwise combine (pair-swap folded into weights) ------
    # roped = [ q_rope(32) | k_rope(16) | v(16) ]
    roped = qkv[:, :QKV_W] * cos_ref[...] + qkv[:, QKV_W:] * sin_ref[...]

    # ---- sliding-window causal mask ---------------------------------------
    row = jax.lax.broadcasted_iota(jnp.int32, (s, s), 0)
    col = jax.lax.broadcasted_iota(jnp.int32, (s, s), 1)
    mask = (col <= row) & ((row - col) < window)

    # ---- per-head attention + fused wo accumulation (GQA via lane slices) -
    attn_proj = jnp.zeros((s, DIM), jnp.float32)
    for h in range(N_HEADS):
        g = h // REPEATS                                    # kv head for GQA
        q_h = roped[:, h * HEAD_DIM:(h + 1) * HEAD_DIM]                     # (S, hd)
        k_h = roped[:, Q_DIM + g * HEAD_DIM:Q_DIM + (g + 1) * HEAD_DIM]     # (S, hd)
        v_h = roped[:, Q_DIM + KV_DIM + g * HEAD_DIM:
                    Q_DIM + KV_DIM + (g + 1) * HEAD_DIM]                    # (S, hd)

        sc = jax.lax.dot_general(q_h, k_h, (((1,), (1,)), ((), ())),
                                 preferred_element_type=jnp.float32) * scale
        sc = jnp.where(mask, sc, -1e30)
        m = jnp.max(sc, axis=-1, keepdims=True)
        p = jnp.exp(sc - m)
        l = jnp.sum(p, axis=-1, keepdims=True)
        p = p * pl.reciprocal(l, approx=True)               # EUP reciprocal
        o_h = jnp.dot(p, v_h, preferred_element_type=jnp.float32)           # (S, hd)
        # accumulate head contribution directly into the wo projection
        attn_proj = attn_proj + jnp.dot(
            o_h, wo_ref[h * HEAD_DIM:(h + 1) * HEAD_DIM, :],
            preferred_element_type=jnp.float32)

    h_mid = x + attn_proj                                   # residual 1

    # ---- FFN RMSNorm + fused w1/w3 (lane-dense 128) + SwiGLU + residual ---
    ms2 = jnp.mean(h_mid * h_mid, axis=-1, keepdims=True)
    hn = h_mid * jax.lax.rsqrt(ms2 + eps) * gf_ref[...]
    h13 = jnp.dot(hn, w13_ref[...], preferred_element_type=jnp.float32)     # (S, 128)
    a = h13[:, :HIDDEN_DIM]
    b = h13[:, HIDDEN_DIM:]
    gate = a * pl.reciprocal(1.0 + jnp.exp(-a), approx=True)   # silu via EUP
    o_ref[...] = h_mid + jnp.dot(gate * b, w2_ref[...],
                                 preferred_element_type=jnp.float32)


def transformer_block(x, fused):
    s = x.shape[0]
    kernel = functools.partial(_fused_block_kernel, eps=NORM_EPS,
                               scale=HEAD_DIM ** -0.5, window=SLIDING_WINDOW)
    return pl.pallas_call(
        kernel,
        out_shape=jax.ShapeDtypeStruct((s, DIM), jnp.float32),
        in_specs=[_vmem()] * 9,
        out_specs=_vmem(),
    )(x, fused['attn_norm'], fused['ffn_norm'], fused['w_qkv'],
      fused['mult_cos'], fused['mult_sin'], fused['wo'],
      fused['w13'], fused['w2'])


# ---------------------------------------------------------------------------
# One-time weight preparation (done outside the hot path)
# ---------------------------------------------------------------------------
def _pair_swap(n):
    """P s.t. (x @ P)[2i] = -x[2i+1], (x @ P)[2i+1] = x[2i] (interleaved RoPE)."""
    p = np.zeros((n, n), np.float32)
    idx = np.arange(0, n, 2)
    p[idx + 1, idx] = -1.0
    p[idx, idx + 1] = 1.0
    return jnp.asarray(p)


def make_fused_params(params, cos, sin):
    s = cos.shape[0]
    cd = jnp.repeat(cos[:, 0, :], 2, axis=-1)               # (S, hd) per-pair dup
    sd = jnp.repeat(sin[:, 0, :], 2, axis=-1)
    cos_q = jnp.tile(cd, (1, N_HEADS))                      # (S, Q_DIM)
    sin_q = jnp.tile(sd, (1, N_HEADS))
    cos_k = jnp.tile(cd, (1, N_KV_HEADS))                   # (S, KV_DIM)
    sin_k = jnp.tile(sd, (1, N_KV_HEADS))
    mult_cos = jnp.concatenate(
        [cos_q, cos_k, jnp.ones((s, KV_DIM), jnp.float32)], axis=-1)   # (S, 64)
    mult_sin = jnp.concatenate(
        [sin_q, sin_k, jnp.zeros((s, KV_DIM), jnp.float32)], axis=-1)  # (S, 64)

    pq = _pair_swap(Q_DIM)
    pk = _pair_swap(KV_DIM)
    w_qkv = jnp.concatenate([
        params['wq'], params['wk'], params['wv'],
        params['wq'] @ pq, params['wk'] @ pk,
        jnp.zeros((DIM, KV_DIM), jnp.float32),              # pad to 128 lanes
    ], axis=-1)                                             # (DIM, 128)
    w13 = jnp.concatenate([params['w1'], params['w3']], axis=-1)   # (DIM, 128)

    return {
        'attn_norm': params['attn_norm'],
        'ffn_norm': params['ffn_norm'],
        'w_qkv': w_qkv,
        'mult_cos': mult_cos,
        'mult_sin': mult_sin,
        'wo': params['wo'],
        'w13': w13,
        'w2': params['w2'],
    }


# ---------------------------------------------------------------------------
# RoPE helpers (interleaved, matches torch view_as_complex convention)
# ---------------------------------------------------------------------------
def apply_rope(x, cos, sin):
    # x: (S, H, hd); cos/sin: (S, 1, hd//2)
    x1 = x[..., 0::2]
    x2 = x[..., 1::2]
    o1 = x1 * cos - x2 * sin
    o2 = x1 * sin + x2 * cos
    return jnp.stack([o1, o2], axis=-1).reshape(x.shape)


def make_freqs(seq, head_dim, theta=10000.0):
    inv = 1.0 / (theta ** (jnp.arange(0, head_dim, 2, dtype=jnp.float32) / head_dim))
    t = jnp.arange(seq, dtype=jnp.float32)
    ang = jnp.outer(t, inv)                                 # (S, hd//2)
    return jnp.cos(ang)[:, None, :], jnp.sin(ang)[:, None, :]


# ---------------------------------------------------------------------------
# Pure-JAX reference (mirrors the PyTorch forward) for validation
# ---------------------------------------------------------------------------
def reference_block(x, params, cos, sin):
    def rms(t, g):
        tf = t.astype(jnp.float32)
        return tf * jax.lax.rsqrt(jnp.mean(tf * tf, -1, keepdims=True) + NORM_EPS) * g

    s = x.shape[0]
    h1 = rms(x, params['attn_norm'])
    q = (h1 @ params['wq']).reshape(s, N_HEADS, HEAD_DIM)
    k = (h1 @ params['wk']).reshape(s, N_KV_HEADS, HEAD_DIM)
    v = (h1 @ params['wv']).reshape(s, N_KV_HEADS, HEAD_DIM)
    q = apply_rope(q, cos, sin)
    k = apply_rope(k, cos, sin)
    k = jnp.repeat(k, REPEATS, axis=1)
    v = jnp.repeat(v, REPEATS, axis=1)
    qh, kh, vh = (t.transpose(1, 0, 2) for t in (q, k, v))
    scores = jnp.einsum('hqd,hkd->hqk', qh, kh) * (HEAD_DIM ** -0.5)
    i = jnp.arange(s)[:, None]
    j = jnp.arange(s)[None, :]
    mask = (j <= i) & ((i - j) < SLIDING_WINDOW)
    scores = jnp.where(mask[None], scores, -1e30)
    p = jax.nn.softmax(scores, axis=-1)
    o = jnp.einsum('hqk,hkd->hqd', p, vh).transpose(1, 0, 2).reshape(s, -1)
    h = x + o @ params['wo']
    h2 = rms(h, params['ffn_norm'])
    a = h2 @ params['w1']
    b = h2 @ params['w3']
    return h + (jax.nn.silu(a) * b) @ params['w2']


# ---------------------------------------------------------------------------
# Parameter init (deterministic, synthetic)
# ---------------------------------------------------------------------------
def init_params(key):
    ks = jax.random.split(key, 7)
    sc = 0.02
    return {
        # weights stored transposed: (in, out)
        'wq': sc * jax.random.normal(ks[0], (DIM, Q_DIM), jnp.float32),
        'wk': sc * jax.random.normal(ks[1], (DIM, KV_DIM), jnp.float32),
        'wv': sc * jax.random.normal(ks[2], (DIM, KV_DIM), jnp.float32),
        'wo': sc * jax.random.normal(ks[3], (Q_DIM, DIM), jnp.float32),
        'w1': sc * jax.random.normal(ks[4], (DIM, HIDDEN_DIM), jnp.float32),
        'w2': sc * jax.random.normal(ks[5], (HIDDEN_DIM, DIM), jnp.float32),
        'w3': sc * jax.random.normal(ks[6], (DIM, HIDDEN_DIM), jnp.float32),
        # RMSNorm weights, kept 2D (1, D) for TPU friendliness
        'attn_norm': jnp.ones((1, DIM), jnp.float32),
        'ffn_norm': jnp.ones((1, DIM), jnp.float32),
    }


if __name__ == "__main__":
    key = jax.random.PRNGKey(0)
    pkey, xkey = jax.random.split(key)
    params = init_params(pkey)
    x = jax.random.normal(xkey, (SEQ, DIM), jnp.float32)
    cos, sin = make_freqs(SEQ, HEAD_DIM)

    fused = make_fused_params(params, cos, sin)   # one-time weight prep
    fused = jax.tree_util.tree_map(jax.block_until_ready, fused)

    out = jax.jit(transformer_block)(x, fused)
    out = jax.block_until_ready(out)

    with jax.default_matmul_precision("highest"):
        ref = reference_block(x, params, cos, sin)
    ref = jax.block_until_ready(ref)

    assert out.shape == (SEQ, DIM)
    np.testing.assert_allclose(np.asarray(out), np.asarray(ref),
                               rtol=2e-2, atol=2e-3)
    print("KERNEL_OK")
</pallas_src>

<mosaic_0001>
module attributes {stable_mosaic.version = 11 : i64} {
  func.func @_fused_block_kernel(%arg0: memref<8x32xf32, #tpu.memory_space<vmem>>, %arg1: memref<1x32xf32, #tpu.memory_space<vmem>>, %arg2: memref<1x32xf32, #tpu.memory_space<vmem>>, %arg3: memref<32x128xf32, #tpu.memory_space<vmem>>, %arg4: memref<8x64xf32, #tpu.memory_space<vmem>>, %arg5: memref<8x64xf32, #tpu.memory_space<vmem>>, %arg6: memref<32x32xf32, #tpu.memory_space<vmem>>, %arg7: memref<32x128xf32, #tpu.memory_space<vmem>>, %arg8: memref<64x32xf32, #tpu.memory_space<vmem>>, %arg9: memref<8x32xf32, #tpu.memory_space<vmem>>) attributes {dimension_semantics = [], scalar_prefetch = 0 : i64, scratch_operands = 0 : i64, tpu.core_type = #tpu.core_type<tc>} {
    %c0 = arith.constant 0 : index
    %c0_0 = arith.constant 0 : index
    %0 = vector.load %arg0[%c0, %c0_0] : memref<8x32xf32, #tpu.memory_space<vmem>>, vector<8x32xf32>
    %1 = arith.mulf %0, %0 : vector<8x32xf32>
    %cst = arith.constant dense<0.000000e+00> : vector<8xf32>
    %2 = vector.multi_reduction <add>, %1, %cst [1] : vector<8x32xf32> to vector<8xf32>
    %3 = vector.shape_cast %2 : vector<8xf32> to vector<8x1xf32>
    %cst_1 = arith.constant 3.200000e+01 : f32
    %4 = vector.broadcast %cst_1 : f32 to vector<8x1xf32>
    %5 = arith.divf %3, %4 : vector<8x1xf32>
    %cst_2 = arith.constant 9.99999974E-6 : f32
    %6 = vector.broadcast %cst_2 : f32 to vector<8x1xf32>
    %7 = arith.addf %5, %6 : vector<8x1xf32>
    %8 = math.rsqrt %7 : vector<8x1xf32>
    %9 = vector.broadcast %8 : vector<8x1xf32> to vector<8x32xf32>
    %10 = arith.mulf %0, %9 : vector<8x32xf32>
    %c0_3 = arith.constant 0 : index
    %c0_4 = arith.constant 0 : index
    %11 = vector.load %arg1[%c0_3, %c0_4] : memref<1x32xf32, #tpu.memory_space<vmem>>, vector<1x32xf32>
    %12 = vector.broadcast %11 : vector<1x32xf32> to vector<8x32xf32>
    %13 = arith.mulf %10, %12 : vector<8x32xf32>
    %c0_5 = arith.constant 0 : index
    %c0_6 = arith.constant 0 : index
    %14 = vector.load %arg3[%c0_5, %c0_6] : memref<32x128xf32, #tpu.memory_space<vmem>>, vector<32x128xf32>
    %cst_7 = arith.constant dense<0.000000e+00> : vector<8x128xf32>
    %15 = tpu.matmul %13, %14, %cst_7 {dimension_numbers = #tpu.dot_dimension_numbers<[1], [0], [0], [1], [0, 0, 1, 1], [], []>} : vector<8x32xf32>, vector<32x128xf32>, vector<8x128xf32> -> vector<8x128xf32>
    %16 = vector.extract_strided_slice %15 {offsets = [0, 0], sizes = [8, 64], strides = [1, 1]} : vector<8x128xf32> to vector<8x64xf32>
    %c0_8 = arith.constant 0 : index
    %c0_9 = arith.constant 0 : index
    %17 = vector.load %arg4[%c0_8, %c0_9] : memref<8x64xf32, #tpu.memory_space<vmem>>, vector<8x64xf32>
    %18 = arith.mulf %16, %17 : vector<8x64xf32>
    %19 = vector.extract_strided_slice %15 {offsets = [0, 64], sizes = [8, 64], strides = [1, 1]} : vector<8x128xf32> to vector<8x64xf32>
    %c0_10 = arith.constant 0 : index
    %c0_11 = arith.constant 0 : index
    %20 = vector.load %arg5[%c0_10, %c0_11] : memref<8x64xf32, #tpu.memory_space<vmem>>, vector<8x64xf32>
    %21 = arith.mulf %19, %20 : vector<8x64xf32>
    %22 = arith.addf %18, %21 : vector<8x64xf32>
    %23 = tpu.iota {dimensions = array<i32: 0>} : vector<8x8xi32>
    %24 = tpu.iota {dimensions = array<i32: 1>} : vector<8x8xi32>
    %25 = arith.cmpi sle, %24, %23 : vector<8x8xi32>
    %26 = arith.subi %23, %24 : vector<8x8xi32>
    %c4_i32 = arith.constant 4 : i32
    %27 = vector.broadcast %c4_i32 : i32 to vector<8x8xi32>
    %28 = arith.cmpi slt, %26, %27 : vector<8x8xi32>
    %29 = arith.andi %25, %28 : vector<8x8xi1>
    %cst_12 = arith.constant 0.000000e+00 : f32
    %30 = vector.broadcast %cst_12 : f32 to vector<8x32xf32>
    %31 = vector.extract_strided_slice %22 {offsets = [0, 0], sizes = [8, 8], strides = [1, 1]} : vector<8x64xf32> to vector<8x8xf32>
    %32 = vector.extract_strided_slice %22 {offsets = [0, 32], sizes = [8, 8], strides = [1, 1]} : vector<8x64xf32> to vector<8x8xf32>
    %33 = vector.extract_strided_slice %22 {offsets = [0, 48], sizes = [8, 8], strides = [1, 1]} : vector<8x64xf32> to vector<8x8xf32>
    %cst_13 = arith.constant dense<0.000000e+00> : vector<8x8xf32>
    %34 = tpu.matmul %31, %32, %cst_13 {dimension_numbers = #tpu.dot_dimension_numbers<[1], [1], [0], [0], [0, 0, 1, 0], [], []>} : vector<8x8xf32>, vector<8x8xf32>, vector<8x8xf32> -> vector<8x8xf32>
    %cst_14 = arith.constant 0.353553385 : f32
    %35 = vector.broadcast %cst_14 : f32 to vector<8x8xf32>
    %36 = arith.mulf %34, %35 : vector<8x8xf32>
    %cst_15 = arith.constant -1.000000e+30 : f32
    %37 = vector.broadcast %cst_15 : f32 to vector<8x8xf32>
    %38 = arith.select %29, %36, %37 : vector<8x8xi1>, vector<8x8xf32>
    %cst_16 = arith.constant dense<0xFF800000> : vector<8xf32>
    %39 = vector.multi_reduction <maximumf>, %38, %cst_16 [1] : vector<8x8xf32> to vector<8xf32>
    %40 = vector.shape_cast %39 : vector<8xf32> to vector<8x1xf32>
    %41 = vector.broadcast %40 : vector<8x1xf32> to vector<8x8xf32>
    %42 = arith.subf %38, %41 : vector<8x8xf32>
    %43 = math.exp %42 : vector<8x8xf32>
    %cst_17 = arith.constant dense<0.000000e+00> : vector<8xf32>
    %44 = vector.multi_reduction <add>, %43, %cst_17 [1] : vector<8x8xf32> to vector<8xf32>
    %45 = vector.shape_cast %44 : vector<8xf32> to vector<8x1xf32>
    %46 = tpu.reciprocal %45 {approx = true} : vector<8x1xf32> -> vector<8x1xf32>
    %47 = vector.broadcast %46 : vector<8x1xf32> to vector<8x8xf32>
    %48 = arith.mulf %43, %47 : vector<8x8xf32>
    %cst_18 = arith.constant dense<0.000000e+00> : vector<8x8xf32>
    %49 = tpu.matmul %48, %33, %cst_18 {dimension_numbers = #tpu.dot_dimension_numbers<[1], [0], [0], [1], [0, 0, 1, 1], [], []>} : vector<8x8xf32>, vector<8x8xf32>, vector<8x8xf32> -> vector<8x8xf32>
    %c0_19 = arith.constant 0 : index
    %c0_20 = arith.constant 0 : index
    %50 = vector.load %arg6[%c0_19, %c0_20] : memref<32x32xf32, #tpu.memory_space<vmem>>, vector<8x32xf32>
    %cst_21 = arith.constant dense<0.000000e+00> : vector<8x32xf32>
    %51 = tpu.matmul %49, %50, %cst_21 {dimension_numbers = #tpu.dot_dimension_numbers<[1], [0], [0], [1], [0, 0, 1, 1], [], []>} : vector<8x8xf32>, vector<8x32xf32>, vector<8x32xf32> -> vector<8x32xf32>
    %52 = arith.addf %30, %51 : vector<8x32xf32>
    %53 = vector.extract_strided_slice %22 {offsets = [0, 8], sizes = [8, 8], strides = [1, 1]} : vector<8x64xf32> to vector<8x8xf32>
    %54 = vector.extract_strided_slice %22 {offsets = [0, 32], sizes = [8, 8], strides = [1, 1]} : vector<8x64xf32> to vector<8x8xf32>
    %55 = vector.extract_strided_slice %22 {offsets = [0, 48], sizes = [8, 8], strides = [1, 1]} : vector<8x64xf32> to vector<8x8xf32>
    %cst_22 = arith.constant dense<0.000000e+00> : vector<8x8xf32>
    %56 = tpu.matmul %53, %54, %cst_22 {dimension_numbers = #tpu.dot_dimension_numbers<[1], [1], [0], [0], [0, 0, 1, 0], [], []>} : vector<8x8xf32>, vector<8x8xf32>, vector<8x8xf32> -> vector<8x8xf32>
    %cst_23 = arith.constant 0.353553385 : f32
    %57 = vector.broadcast %cst_23 : f32 to vector<8x8xf32>
    %58 = arith.mulf %56, %57 : vector<8x8xf32>
    %cst_24 = arith.constant -1.000000e+30 : f32
    %59 = vector.broadcast %cst_24 : f32 to vector<8x8xf32>
    %60 = arith.select %29, %58, %59 : vector<8x8xi1>, vector<8x8xf32>
    %cst_25 = arith.constant dense<0xFF800000> : vector<8xf32>
    %61 = vector.multi_reduction <maximumf>, %60, %cst_25 [1] : vector<8x8xf32> to vector<8xf32>
    %62 = vector.shape_cast %61 : vector<8xf32> to vector<8x1xf32>
    %63 = vector.broadcast %62 : vector<8x1xf32> to vector<8x8xf32>
    %64 = arith.subf %60, %63 : vector<8x8xf32>
    %65 = math.exp %64 : vector<8x8xf32>
    %cst_26 = arith.constant dense<0.000000e+00> : vector<8xf32>
    %66 = vector.multi_reduction <add>, %65, %cst_26 [1] : vector<8x8xf32> to vector<8xf32>
    %67 = vector.shape_cast %66 : vector<8xf32> to vector<8x1xf32>
    %68 = tpu.reciprocal %67 {approx = true} : vector<8x1xf32> -> vector<8x1xf32>
    %69 = vector.broadcast %68 : vector<8x1xf32> to vector<8x8xf32>
    %70 = arith.mulf %65, %69 : vector<8x8xf32>
    %cst_27 = arith.constant dense<0.000000e+00> : vector<8x8xf32>
    %71 = tpu.matmul %70, %55, %cst_27 {dimension_numbers = #tpu.dot_dimension_numbers<[1], [0], [0], [1], [0, 0, 1, 1], [], []>} : vector<8x8xf32>, vector<8x8xf32>, vector<8x8xf32> -> vector<8x8xf32>
    %c8 = arith.constant 8 : index
    %c0_28 = arith.constant 0 : index
    %72 = vector.load %arg6[%c8, %c0_28] : memref<32x32xf32, #tpu.memory_space<vmem>>, vector<8x32xf32>
    %cst_29 = arith.constant dense<0.000000e+00> : vector<8x32xf32>
    %73 = tpu.matmul %71, %72, %cst_29 {dimension_numbers = #tpu.dot_dimension_numbers<[1], [0], [0], [1], [0, 0, 1, 1], [], []>} : vector<8x8xf32>, vector<8x32xf32>, vector<8x32xf32> -> vector<8x32xf32>
    %74 = arith.addf %52, %73 : vector<8x32xf32>
    %75 = vector.extract_strided_slice %22 {offsets = [0, 16], sizes = [8, 8], strides = [1, 1]} : vector<8x64xf32> to vector<8x8xf32>
    %76 = vector.extract_strided_slice %22 {offsets = [0, 40], sizes = [8, 8], strides = [1, 1]} : vector<8x64xf32> to vector<8x8xf32>
    %77 = vector.extract_strided_slice %22 {offsets = [0, 56], sizes = [8, 8], strides = [1, 1]} : vector<8x64xf32> to vector<8x8xf32>
    %cst_30 = arith.constant dense<0.000000e+00> : vector<8x8xf32>
    %78 = tpu.matmul %75, %76, %cst_30 {dimension_numbers = #tpu.dot_dimension_numbers<[1], [1], [0], [0], [0, 0, 1, 0], [], []>} : vector<8x8xf32>, vector<8x8xf32>, vector<8x8xf32> -> vector<8x8xf32>
    %cst_31 = arith.constant 0.353553385 : f32
    %79 = vector.broadcast %cst_31 : f32 to vector<8x8xf32>
    %80 = arith.mulf %78, %79 : vector<8x8xf32>
    %cst_32 = arith.constant -1.000000e+30 : f32
    %81 = vector.broadcast %cst_32 : f32 to vector<8x8xf32>
    %82 = arith.select %29, %80, %81 : vector<8x8xi1>, vector<8x8xf32>
    %cst_33 = arith.constant dense<0xFF800000> : vector<8xf32>
    %83 = vector.multi_reduction <maximumf>, %82, %cst_33 [1] : vector<8x8xf32> to vector<8xf32>
    %84 = vector.shape_cast %83 : vector<8xf32> to vector<8x1xf32>
    %85 = vector.broadcast %84 : vector<8x1xf32> to vector<8x8xf32>
    %86 = arith.subf %82, %85 : vector<8x8xf32>
    %87 = math.exp %86 : vector<8x8xf32>
    %cst_34 = arith.constant dense<0.000000e+00> : vector<8xf32>
    %88 = vector.multi_reduction <add>, %87, %cst_34 [1] : vector<8x8xf32> to vector<8xf32>
    %89 = vector.shape_cast %88 : vector<8xf32> to vector<8x1xf32>
    %90 = tpu.reciprocal %89 {approx = true} : vector<8x1xf32> -> vector<8x1xf32>
    %91 = vector.broadcast %90 : vector<8x1xf32> to vector<8x8xf32>
    %92 = arith.mulf %87, %91 : vector<8x8xf32>
    %cst_35 = arith.constant dense<0.000000e+00> : vector<8x8xf32>
    %93 = tpu.matmul %92, %77, %cst_35 {dimension_numbers = #tpu.dot_dimension_numbers<[1], [0], [0], [1], [0, 0, 1, 1], [], []>} : vector<8x8xf32>, vector<8x8xf32>, vector<8x8xf32> -> vector<8x8xf32>
    %c16 = arith.constant 16 : index
    %c0_36 = arith.constant 0 : index
    %94 = vector.load %arg6[%c16, %c0_36] : memref<32x32xf32, #tpu.memory_space<vmem>>, vector<8x32xf32>
    %cst_37 = arith.constant dense<0.000000e+00> : vector<8x32xf32>
    %95 = tpu.matmul %93, %94, %cst_37 {dimension_numbers = #tpu.dot_dimension_numbers<[1], [0], [0], [1], [0, 0, 1, 1], [], []>} : vector<8x8xf32>, vector<8x32xf32>, vector<8x32xf32> -> vector<8x32xf32>
    %96 = arith.addf %74, %95 : vector<8x32xf32>
    %97 = vector.extract_strided_slice %22 {offsets = [0, 24], sizes = [8, 8], strides = [1, 1]} : vector<8x64xf32> to vector<8x8xf32>
    %98 = vector.extract_strided_slice %22 {offsets = [0, 40], sizes = [8, 8], strides = [1, 1]} : vector<8x64xf32> to vector<8x8xf32>
    %99 = vector.extract_strided_slice %22 {offsets = [0, 56], sizes = [8, 8], strides = [1, 1]} : vector<8x64xf32> to vector<8x8xf32>
    %cst_38 = arith.constant dense<0.000000e+00> : vector<8x8xf32>
    %100 = tpu.matmul %97, %98, %cst_38 {dimension_numbers = #tpu.dot_dimension_numbers<[1], [1], [0], [0], [0, 0, 1, 0], [], []>} : vector<8x8xf32>, vector<8x8xf32>, vector<8x8xf32> -> vector<8x8xf32>
    %cst_39 = arith.constant 0.353553385 : f32
    %101 = vector.broadcast %cst_39 : f32 to vector<8x8xf32>
    %102 = arith.mulf %100, %101 : vector<8x8xf32>
    %cst_40 = arith.constant -1.000000e+30 : f32
    %103 = vector.broadcast %cst_40 : f32 to vector<8x8xf32>
    %104 = arith.select %29, %102, %103 : vector<8x8xi1>, vector<8x8xf32>
    %cst_41 = arith.constant dense<0xFF800000> : vector<8xf32>
    %105 = vector.multi_reduction <maximumf>, %104, %cst_41 [1] : vector<8x8xf32> to vector<8xf32>
    %106 = vector.shape_cast %105 : vector<8xf32> to vector<8x1xf32>
    %107 = vector.broadcast %106 : vector<8x1xf32> to vector<8x8xf32>
    %108 = arith.subf %104, %107 : vector<8x8xf32>
    %109 = math.exp %108 : vector<8x8xf32>
    %cst_42 = arith.constant dense<0.000000e+00> : vector<8xf32>
    %110 = vector.multi_reduction <add>, %109, %cst_42 [1] : vector<8x8xf32> to vector<8xf32>
    %111 = vector.shape_cast %110 : vector<8xf32> to vector<8x1xf32>
    %112 = tpu.reciprocal %111 {approx = true} : vector<8x1xf32> -> vector<8x1xf32>
    %113 = vector.broadcast %112 : vector<8x1xf32> to vector<8x8xf32>
    %114 = arith.mulf %109, %113 : vector<8x8xf32>
    %cst_43 = arith.constant dense<0.000000e+00> : vector<8x8xf32>
    %115 = tpu.matmul %114, %99, %cst_43 {dimension_numbers = #tpu.dot_dimension_numbers<[1], [0], [0], [1], [0, 0, 1, 1], [], []>} : vector<8x8xf32>, vector<8x8xf32>, vector<8x8xf32> -> vector<8x8xf32>
    %c24 = arith.constant 24 : index
    %c0_44 = arith.constant 0 : index
    %116 = vector.load %arg6[%c24, %c0_44] : memref<32x32xf32, #tpu.memory_space<vmem>>, vector<8x32xf32>
    %cst_45 = arith.constant dense<0.000000e+00> : vector<8x32xf32>
    %117 = tpu.matmul %115, %116, %cst_45 {dimension_numbers = #tpu.dot_dimension_numbers<[1], [0], [0], [1], [0, 0, 1, 1], [], []>} : vector<8x8xf32>, vector<8x32xf32>, vector<8x32xf32> -> vector<8x32xf32>
    %118 = arith.addf %96, %117 : vector<8x32xf32>
    %119 = arith.addf %0, %118 : vector<8x32xf32>
    %120 = arith.mulf %119, %119 : vector<8x32xf32>
    %cst_46 = arith.constant dense<0.000000e+00> : vector<8xf32>
    %121 = vector.multi_reduction <add>, %120, %cst_46 [1] : vector<8x32xf32> to vector<8xf32>
    %122 = vector.shape_cast %121 : vector<8xf32> to vector<8x1xf32>
    %cst_47 = arith.constant 3.200000e+01 : f32
    %123 = vector.broadcast %cst_47 : f32 to vector<8x1xf32>
    %124 = arith.divf %122, %123 : vector<8x1xf32>
    %cst_48 = arith.constant 9.99999974E-6 : f32
    %125 = vector.broadcast %cst_48 : f32 to vector<8x1xf32>
    %126 = arith.addf %124, %125 : vector<8x1xf32>
    %127 = math.rsqrt %126 : vector<8x1xf32>
    %128 = vector.broadcast %127 : vector<8x1xf32> to vector<8x32xf32>
    %129 = arith.mulf %119, %128 : vector<8x32xf32>
    %c0_49 = arith.constant 0 : index
    %c0_50 = arith.constant 0 : index
    %130 = vector.load %arg2[%c0_49, %c0_50] : memref<1x32xf32, #tpu.memory_space<vmem>>, vector<1x32xf32>
    %131 = vector.broadcast %130 : vector<1x32xf32> to vector<8x32xf32>
    %132 = arith.mulf %129, %131 : vector<8x32xf32>
    %c0_51 = arith.constant 0 : index
    %c0_52 = arith.constant 0 : index
    %133 = vector.load %arg7[%c0_51, %c0_52] : memref<32x128xf32, #tpu.memory_space<vmem>>, vector<32x128xf32>
    %cst_53 = arith.constant dense<0.000000e+00> : vector<8x128xf32>
    %134 = tpu.matmul %132, %133, %cst_53 {dimension_numbers = #tpu.dot_dimension_numbers<[1], [0], [0], [1], [0, 0, 1, 1], [], []>} : vector<8x32xf32>, vector<32x128xf32>, vector<8x128xf32> -> vector<8x128xf32>
    %135 = vector.extract_strided_slice %134 {offsets = [0, 0], sizes = [8, 64], strides = [1, 1]} : vector<8x128xf32> to vector<8x64xf32>
    %136 = vector.extract_strided_slice %134 {offsets = [0, 64], sizes = [8, 64], strides = [1, 1]} : vector<8x128xf32> to vector<8x64xf32>
    %cst_54 = arith.constant 0.000000e+00 : f32
    %137 = vector.broadcast %cst_54 : f32 to vector<8x64xf32>
    %138 = arith.subf %137, %135 : vector<8x64xf32>
    %139 = math.exp %138 : vector<8x64xf32>
    %cst_55 = arith.constant 1.000000e+00 : f32
    %140 = vector.broadcast %cst_55 : f32 to vector<8x64xf32>
    %141 = arith.addf %140, %139 : vector<8x64xf32>
    %142 = tpu.reciprocal %141 {approx = true} : vector<8x64xf32> -> vector<8x64xf32>
    %143 = arith.mulf %135, %142 : vector<8x64xf32>
    %144 = arith.mulf %143, %136 : vector<8x64xf32>
    %c0_56 = arith.constant 0 : index
    %c0_57 = arith.constant 0 : index
    %145 = vector.load %arg8[%c0_56, %c0_57] : memref<64x32xf32, #tpu.memory_space<vmem>>, vector<64x32xf32>
    %cst_58 = arith.constant dense<0.000000e+00> : vector<8x32xf32>
    %146 = tpu.matmul %144, %145, %cst_58 {dimension_numbers = #tpu.dot_dimension_numbers<[1], [0], [0], [1], [0, 0, 1, 1], [], []>} : vector<8x64xf32>, vector<64x32xf32>, vector<8x32xf32> -> vector<8x32xf32>
    %147 = arith.addf %119, %146 : vector<8x32xf32>
    %c0_59 = arith.constant 0 : index
    %c0_60 = arith.constant 0 : index
    %148 = vector.load %arg9[%c0_59, %c0_60] : memref<8x32xf32, #tpu.memory_space<vmem>>, vector<8x32xf32>
    tpu.vector_store %arg9[%c0_59, %c0_60], %147 {strides = array<i32>} : memref<8x32xf32, #tpu.memory_space<vmem>>, vector<8x32xf32>,
    return
  }
}

</mosaic_0001>

<bundles_post_ra>
// kernel: transformer_block.1
= control target key start
LH: loop header
LB: loop body
LE: loop exit
PB: predicated region body
PF: predicated region fallthrough
CT: control target
= control target key end

     0   :  { %14 = vsyncpa [#allocation3], 0  ;;  %s1909_s0 = inlined_call_operand.hbm [shape: f32[8,32], index: 0, kind: input, shape index: {}]   ;;  %s1910_s1 = inlined_call_operand.vmem [shape: f32[1,32], index: 1, kind: input, shape index: {}]   ;;  %s1911_s2 = inlined_call_operand.vmem [shape: f32[1,32], index: 2, kind: input, shape index: {}]   ;;  %s1912_s3 = inlined_call_operand.vmem [shape: f32[32,128], index: 3, kind: input, shape index: {}]   ;;  %s1913_s4 = inlined_call_operand.vmem [shape: f32[8,64], index: 4, kind: input, shape index: {}]   ;;  %s1914_s5 = inlined_call_operand.hbm [shape: f32[8,64], index: 5, kind: input, shape index: {}]   ;;  %s1915_s6 = inlined_call_operand.vmem [shape: f32[32,32], index: 6, kind: input, shape index: {}]   ;;  %s1916_s7 = inlined_call_operand.vmem [shape: f32[32,128], index: 7, kind: input, shape index: {}]   ;;  %s1917_s8 = inlined_call_operand.vmem [shape: f32[64,32], index: 8, kind: input, shape index: {}]   ;;  %s1918_s9 = inlined_call_operand.hbm [shape: f32[8,32], index: 9, kind: output, shape index: {}]  }
   0x1   :  { %15 = vsyncpa [#allocation6], 0 }
   0x2   :  { %16 = vsyncpa [#allocation4], 0  ;;  %s1630_s30 = smov [#allocation2]   ;;  %s1631_s11 = smov [#allocation5]  }
   0x3   :  { %s23_s10 = sshll.u32 %s1630_s30, 4  ;;  %s41_s12 = sshll.u32 %s1631_s11, 4  ;;  %s24_s10 = int_to_ptr.vmem [resolvable:$true] %s23_s10  ;;  %s42_s12 = int_to_ptr.vmem [resolvable:$true] %s41_s12 }
   0x4   :  { %s1558_s15 = scalar_lea.hbm %s1909_s0, 128 }
   0x5   :  { %p1559_p0 = scmp.ne.s32.totalorder %s1909_s0, %s1558_s15  ;;  %p1562_p1 = scmp.lt.u32.totalorder %s1558_s15, %s1909_s0 }
   0x7   :  { %p1564_p2 = pnand %p1562_p1, %p1559_p0 }
   0x9   :  { %1567 = shalt.err (!%p1564_p2)
}
   0xa   :  { %s1568_s20 = scalar_lea.vmem %s24_s10, 128  ;;  %p1573_p4 = scmp.lt.s32.totalorder %s24_s10, %s24_s10 }
   0xb   :  { %p1569_p3 = scmp.ne.s32.totalorder %s24_s10, %s1568_s20  ;;  %p1574_p5 = scmp.lt.s32.totalorder %s1568_s20, %s1568_s20 }
   0xd   :  { %p1575_p6 = por %p1574_p5, %p1573_p4 }
   0xf   :  { %p1576_p7 = pnand %p1575_p6, %p1569_p3 }
  0x11   :  { %1579 = shalt.err (!%p1576_p7)
}
  0x12   :  { %26 = dma.hbm_to_vmem [thread:$0]  %s1909_s0, 128, %s24_s10, [#allocation3]  }
  0x13   :  { %s1580_s25 = scalar_lea.hbm %s1914_s5, 128 }
  0x14   :  { %p1581_p8 = scmp.ne.s32.totalorder %s1914_s5, %s1580_s25  ;;  %p1584_p9 = scmp.lt.u32.totalorder %s1580_s25, %s1914_s5 }
  0x16   :  { %p1586_p10 = pnand %p1584_p9, %p1581_p8 }
  0x18   :  { %1589 = shalt.err (!%p1586_p10)
}
  0x19   :  { %s1590_s30 = scalar_lea.vmem %s42_s12, 128  ;;  %p1595_p12 = scmp.lt.s32.totalorder %s42_s12, %s42_s12 }
  0x1a   :  { %p1591_p11 = scmp.ne.s32.totalorder %s42_s12, %s1590_s30  ;;  %p1596_p13 = scmp.lt.s32.totalorder %s1590_s30, %s1590_s30 }
  0x1c   :  { %p1597_p0 = por %p1596_p13, %p1595_p12 }
  0x1e   :  { %p1598_p1 = pnand %p1597_p0, %p1591_p11 }
  0x20   :  { %1601 = shalt.err (!%p1598_p1)
}
  0x21   :  { %44 = dma.hbm_to_vmem [thread:$0]  %s1914_s5, 128, %s42_s12, [#allocation6]  }
  0x22   :  { %1624 = dma.done.wait [#allocation3], 128  }
  0x23   :  { %1625 = vsyncadd [#allocation3], 4294967168 }
  0x24   :  { %1626 = dma.done.wait [#allocation6], 128  }
  0x25   :  { %1627 = vsyncadd [#allocation6], 4294967168  ;;  %v1718_v0 = vld [vmem:[#allocation2] sm:$0xff]  ;;  %vm59_vm0 = vcmask 261120   ;;  %v77_v4 = vld [vmem:[%s1912_s3 + $0x8] sm:$0xff]  ;;  %v1632_v6 = vmov 0.0|0.0   ;;  %v166_v29 = vlaneseq }
  0x26   :  { %v58_v1 = vmul.f32 %v1718_v0, %v1718_v0  ;;  %v76_v3 = vld [vmem:[%s1912_s3] sm:$0xff]  ;;  %v78_v5 = vld [vmem:[%s1912_s3 + $0x10] sm:$0xff]  ;;  %1496 = vmatprep.subr.bf16.mxu0 %v1632_v6  ;;  %v79_v8 = vld [vmem:[%s1912_s3 + $0x18] sm:$0xff]  ;;  %vm1633_vm1 = vmmov 0   ;;  %v1634_v9 = vmov 0.0   ;;  %s1635_s18 = smov 64  }
  0x27   :  { %v1497_v7 = vpack.c.bf16 %v77_v4, %v76_v3  ;;  %1403 = vmatprep.mubr.msk.f32.mxu0 %vm1633_vm1, %v1634_v9  ;;  %1411 = vmatprep.subr.mxu1 %v1634_v9  ;;  %v1500_v10 = vpack.c.bf16 %v79_v8, %v78_v5  ;;  %v155_v11 = vld [vmem:[#allocation5] sm:$0xff]  ;;  %v1331_v16 = vld [vmem:[%s1910_s1] ss:$0 sm:$0xff]  ;;  %s1636_s1 = smov 96   ;;  %s1637_s22 = smov 120   ;;  %vm177_vm2 = vcmask 64512  }
  0x28   :  { %v60_v2 = vsel %vm59_vm0, %v58_v1, 0.0  ;;  %1413 = vmatprep.mubr.msk.f32.mxu1 %vm1633_vm1, %v1634_v9  ;;  %v153_v23 = vld [vmem:[%s1913_s4] sm:$0xff]  ;;  %v167_v30 = vshrl.u32 %v166_v29, 7  ;;  %v169_v31 = vand.u32 127, %v166_v29  ;;  %s1638_s4 = smov 88   ;;  %s1639_s23 = smov 80  }
  0x29   :  { %61 = vadd.xlane.f32.xlu0 %v60_v2  ;;  %1498 = vmatpush3.bf16.msra.mxu0 %v1497_v7  ;;  %s1640_s24 = smov 112   ;;  %v502_v54 = vld [vmem:[%s1915_s6 + $0x8] sm:$0xff]  ;;  %v341_v62 = vld [vmem:[%s1915_s6] sm:$0xff]  ;;  %s1641_s29 = smov 104   ;;  %vm1239_vm6 = vcmask 523264  }
  0x2a   :  { %1499 = vmatprep.subr.bf16.mxu0 %v1632_v6  ;;  %v171_v32 = vsub.s32 %v167_v30, %v169_v31  ;;  %vm170_vm3 = vcmp.le.s32.totalorder %v169_v31, %v167_v30  ;;  %s1642_s30 = smov 72  }
  0x2c   :  { %vm172_vm4 = vcmp.lt.s32.totalorder %v171_v32, 4 }
  0x2d   :  { %1501 = vmatpush3.bf16.msra.mxu0 %v1500_v10  ;;  %vm1770_vm5 = vmand %vm170_vm3, %vm172_vm4 }
  0x2e   :  { %1406 = vmatprep.subr.mxu0 %v1634_v9 }
  0x3f   :  { %157 = vrot.lane.b32.xlu0 %v155_v11, %s1635_s18 }
  0xb6   :  { %v62_v12 = vpop.xlane.xlu0 %61 }
  0xb7   :  { %v64_v13 = vmul.f32 0.03125, %v62_v12 }
  0xb9   :  { %v65_v14 = vadd.f32 1e-05, %v64_v13 }
  0xba   :  { %v158_v19 = vpop.permute.xlu0 %157 }
  0xbb   :  { %1534 = vrsqrt.f32 %v65_v14 }
  0xc5   :  { %v1535_v15 = vpop.eup %1534 }
  0xc6   :  { %v67_v17 = vmul.f32 %v1535_v15, %v1718_v0 }
  0xc8   :  { %v75_v18 = vmul.f32 %v1331_v16, %v67_v17 }
  0xca   :  { %1404 = vmatmul.mubr.msk.f32.vlgmr.msra.gmra.mrb[0].mxu0 %vm59_vm0, %v75_v18 }
  0xcb   :  { %1408 = vmatprep.mubr.msk.f32.mxu0 %vm1633_vm1, %v1634_v9 }
 0x19d   :  { %v149_v20 = vpop.f32.mrb[0].mxu0 }
 0x19e   :  { %v160_v21 = vmul.f32 %v158_v19, %v149_v20  ;;  %v1405_v22 = vpop.f32.mrb[1].mxu0  ;;  %v154_v24 = vmul.f32 %v153_v23, %v149_v20  ;;  %v816_v23 = vld [vmem:[%s1915_s6 + $0x10] sm:$0xff] }
 0x1a0   :  { %162 = vrot.lane.b32.xlu1 %v160_v21, %s1635_s18 }
 0x212   :  { %v163_v25 = vpop.permute.xlu1 %162 }
 0x213   :  { %v1755_v26 = vadd.f32 %v163_v25, %v154_v24 }
 0x215   :  { %175 = vrot.lane.b32.xlu1 %v1755_v26, %s1636_s1 }
 0x219   :  { %342 = vrot.lane.b32.xlu1 %v1755_v26, %s1637_s22 }
 0x287   :  { %v176_v27 = vpop.permute.xlu1 %175 }
 0x288   :  { %1407 = vmatpush3.xpose.msk.msra.mxu0 %vm177_vm2, %v176_v27 }
 0x289   :  { %1416 = vmatprep.subr.mxu0 %v1634_v9 }
 0x28b   :  { %1409 = vmatmul.mubr.msk.f32.vlgmr.msra.gmra.mrb[2].mxu0 %vm177_vm2, %v1755_v26  ;;  %v343_v28 = vpop.permute.xlu1 %342 }
 0x28c   :  { %1417 = vmatpush3.xpose.msk.msra.mxu0 %vm177_vm2, %v176_v27  ;;  %1418 = vmatprep.mubr.msk.f32.mxu0 %vm1633_vm1, %v1634_v9 }
 0x28d   :  { %1426 = vmatprep.subr.mxu0 %v1634_v9 }
 0x28f   :  { %1419 = vmatmul.mubr.msk.f32.vlgmr.msra.gmra.mrb[4].mxu0 %vm177_vm2, %v343_v28 }
 0x290   :  { %1428 = vmatprep.mubr.msk.f32.mxu0 %vm1633_vm1, %v1634_v9  ;;  %1427 = vmatpush3.msra.mxu0 %v502_v54 }
 0x291   :  { %1436 = vmatprep.subr.mxu0 %v1634_v9 }
 0x35e   :  { %v248_v33 = vpop.f32.mrb[2].mxu0 }
 0x35f   :  { %v252_v35 = vmul.f32 0.35355338, %v248_v33  ;;  %v1410_v36 = vpop.f32.mrb[3].mxu0 }
 0x361   :  { %v253_v37 = vsel %vm1770_vm5, %v252_v35, -1e+30 }
 0x362   :  { %v412_v38 = vpop.f32.mrb[4].mxu0  ;;  %v254_v39 = vsel %vm177_vm2, %v253_v37, -inf }
 0x363   :  { %v416_v40 = vmul.f32 0.35355338, %v412_v38  ;;  %255 = vmax.xlane.f32.xlu1 %v254_v39  ;;  %v1420_v41 = vpop.f32.mrb[5].mxu0 }
 0x365   :  { %v417_v42 = vsel %vm1770_vm5, %v416_v40, -1e+30 }
 0x366   :  { %v418_v43 = vsel %vm177_vm2, %v417_v42, -inf }
 0x367   :  { %419 = vmax.xlane.f32.xlu0 %v418_v43 }
 0x37d   :  { %651 = vrot.lane.b32.xlu0 %v1755_v26, %s1638_s4 }
 0x3f0   :  { %v256_v44 = vpop.xlane.xlu1 %255 }
 0x3f1   :  { %v257_v45 = vsub.f32 %v253_v37, %v256_v44 }
 0x3f3   :  { %v258_v46 = vmul.f32 1.442695, %v257_v45 }
 0x3f4   :  { %v420_v47 = vpop.xlane.xlu0 %419 }
 0x3f5   :  { %1536 = vpow2.f32 %v258_v46  ;;  %v421_v48 = vsub.f32 %v417_v42, %v420_v47  ;;  %v1051_v42 = vld [vmem:[%s1915_s6 + $0x18] sm:$0xff] }
 0x3f7   :  { %v422_v49 = vmul.f32 1.442695, %v421_v48 }
 0x3f8   :  { %v652_v3 = vpop.permute.xlu0 %651 }
 0x3f9   :  { %1538 = vpow2.f32 %v422_v49 }
 0x3ff   :  { %v1537_v50 = vpop.eup %1536 }
 0x400   :  { %v260_v51 = vsel %vm177_vm2, %v1537_v50, 0.0 }
 0x401   :  { %261 = vadd.xlane.f32.xlu1 %v260_v51 }
 0x403   :  { %v1539_v52 = vpop.eup %1538 }
 0x404   :  { %v424_v53 = vsel %vm177_vm2, %v1539_v52, 0.0 }
 0x405   :  { %425 = vadd.xlane.f32.xlu1 %v424_v53 }
 0x416   :  { %265 = vrot.lane.b32.xlu1 %v1755_v26, %s1639_s23 }
 0x41a   :  { %649 = vrot.lane.b32.xlu1 %v1755_v26, %s1640_s24 }
 0x48e   :  { %v262_v55 = vpop.xlane.xlu1 %261 }
 0x48f   :  { %1540 = vrcp.f32 %v262_v55 }
 0x492   :  { %v426_v56 = vpop.xlane.xlu1 %425 }
 0x493   :  { %1542 = vrcp.f32 %v426_v56  ;;  %v1143_v56 = vld [vmem:[%s1916_s7] sm:$0xff] }
 0x496   :  { %v266_v57 = vpop.permute.xlu1 %265 }
 0x497   :  { %1412 = vmatpush3.msra.mxu1 %v266_v57 }
 0x498   :  { %1421 = vmatprep.subr.mxu1 %v1634_v9 }
 0x499   :  { %v1541_v58 = vpop.eup %1540 }
 0x49a   :  { %v264_v59 = vmul.f32 %v1541_v58, %v1537_v50  ;;  %v650_v5 = vpop.permute.xlu1 %649 }
 0x49c   :  { %1414 = vmatmul.mubr.msk.f32.vlgmr.msra.gmra.mrb[0].mxu1 %vm177_vm2, %v264_v59 }
 0x49d   :  { %v1543_v60 = vpop.eup %1542  ;;  %1422 = vmatpush3.msra.mxu1 %v266_v57  ;;  %1423 = vmatprep.mubr.msk.f32.mxu1 %vm1633_vm1, %v1634_v9  ;;  %v1144_v57 = vld [vmem:[%s1916_s7 + $0x8] sm:$0xff] }
 0x49e   :  { %v428_v61 = vmul.f32 %v1543_v60, %v1539_v52  ;;  %1431 = vmatprep.subr.mxu1 %v1634_v9  ;;  %v1503_v58 = vpack.c.bf16 %v1144_v57, %v1143_v56 }
 0x4a0   :  { %1424 = vmatmul.mubr.msk.f32.vlgmr.msra.gmra.mrb[2].mxu1 %vm177_vm2, %v428_v61 }
 0x4a1   :  { %1433 = vmatprep.mubr.msk.f32.mxu1 %vm1633_vm1, %v1634_v9  ;;  %1432 = vmatpush3.msra.mxu1 %v341_v62 }
 0x4a2   :  { %1441 = vmatprep.subr.mxu1 %v1634_v9 }
 0x56f   :  { %v337_v63 = vpop.f32.mrb[0].mxu1 }
 0x570   :  { %v1415_v1 = vpop.f32.mrb[1].mxu1  ;;  %1434 = vmatmul.mubr.msk.f32.vlgmr.msra.gmra.mrb[4].mxu1 %vm177_vm2, %v337_v63 }
 0x571   :  { %1443 = vmatprep.mubr.msk.f32.mxu1 %vm1633_vm1, %v1634_v9  ;;  %v1349_v1 = vld [vmem:[%s1911_s2] ss:$0 sm:$0xff] }
 0x573   :  { %v498_v2 = vpop.f32.mrb[2].mxu1 }
 0x574   :  { %v1425_v4 = vpop.f32.mrb[3].mxu1  ;;  %1429 = vmatmul.mubr.msk.f32.vlgmr.msra.gmra.mrb[6].mxu0 %vm177_vm2, %v498_v2 }
 0x575   :  { %1437 = vmatpush3.xpose.msk.msra.mxu0 %vm177_vm2, %v652_v3  ;;  %1438 = vmatprep.mubr.msk.f32.mxu0 %vm1633_vm1, %v1634_v9  ;;  %v1231_v4 = vld [vmem:[%s1917_s8] sm:$0xff] }
 0x576   :  { %1446 = vmatprep.subr.mxu0 %v1634_v9 }
 0x578   :  { %1439 = vmatmul.mubr.msk.f32.vlgmr.msra.gmra.mrb[8].mxu0 %vm177_vm2, %v650_v5  ;;  %v1232_v5 = vld [vmem:[%s1917_s8 + $0x8] sm:$0xff] }
 0x579   :  { %1448 = vmatprep.mubr.msk.f32.mxu0 %vm1633_vm1, %v1634_v9  ;;  %1447 = vmatpush3.msra.mxu0 %v816_v23 }
 0x57a   :  { %1456 = vmatprep.subr.mxu0 %v1634_v9 }
 0x643   :  { %v645_v7 = vpop.f32.mrb[4].mxu1 }
 0x644   :  { %v1435_v8 = vpop.f32.mrb[5].mxu1 }
 0x645   :  { %v1509_v8 = vpack.c.bf16 %v1232_v5, %v1231_v4 }
 0x647   :  { %v572_v10 = vpop.f32.mrb[6].mxu0 }
 0x648   :  { %v646_v11 = vadd.f32 %v645_v7, %v572_v10  ;;  %v1430_v12 = vpop.f32.mrb[7].mxu0  ;;  %v1233_v7 = vld [vmem:[%s1917_s8 + $0x10] sm:$0xff]  ;;  %v1234_v10 = vld [vmem:[%s1917_s8 + $0x18] sm:$0xff] }
 0x649   :  { %v1235_v12 = vld [vmem:[%s1917_s8 + $0x20] sm:$0xff] }
 0x64b   :  { %v723_v13 = vpop.f32.mrb[8].mxu0 }
 0x64c   :  { %v727_v14 = vmul.f32 0.35355338, %v723_v13  ;;  %v1440_v15 = vpop.f32.mrb[9].mxu0  ;;  %v1236_v13 = vld [vmem:[%s1917_s8 + $0x28] sm:$0xff] }
 0x64d   :  { %v1237_v15 = vld [vmem:[%s1917_s8 + $0x30] sm:$0xff] }
 0x64e   :  { %v728_v16 = vsel %vm1770_vm5, %v727_v14, -1e+30  ;;  %v1515_v14 = vpack.c.bf16 %v1236_v13, %v1235_v12 }
 0x64f   :  { %v729_v17 = vsel %vm177_vm2, %v728_v16, -inf }
 0x650   :  { %730 = vmax.xlane.f32.xlu1 %v729_v17 }
 0x661   :  { %891 = vrot.lane.b32.xlu1 %v1755_v26, %s1641_s29 }
 0x6dd   :  { %v731_v18 = vpop.xlane.xlu1 %730 }
 0x6de   :  { %v732_v19 = vsub.f32 %v728_v16, %v731_v18  ;;  %v1238_v16 = vld [vmem:[%s1917_s8 + $0x38] sm:$0xff]  ;;  %s1643_s8 = smov [#allocation7]  }
 0x6df   :  { %v1518_v17 = vpack.c.bf16 %v1238_v16, %v1237_v15  ;;  %s1321_s11 = sshll.u32 %s1643_s8, 4  ;;  %s1322_s11 = int_to_ptr.vmem [resolvable:$true] %s1321_s11 }
 0x6e0   :  { %v733_v20 = vmul.f32 1.442695, %v732_v19  ;;  %p1607_p3 = scmp.lt.s32.totalorder %s1322_s11, %s1322_s11 }
 0x6e2   :  { %1544 = vpow2.f32 %v733_v20 }
 0x6ec   :  { %v1545_v21 = vpop.eup %1544 }
 0x6ed   :  { %v735_v22 = vsel %vm177_vm2, %v1545_v21, 0.0 }
 0x6ee   :  { %736 = vadd.xlane.f32.xlu0 %v735_v22 }
 0x704   :  { %740 = vrot.lane.b32.xlu0 %v1755_v26, %s1642_s30  ;;  %v892_v26 = vpop.permute.xlu1 %891 }
 0x77b   :  { %v737_v24 = vpop.xlane.xlu0 %736 }
 0x77c   :  { %1546 = vrcp.f32 %v737_v24 }
 0x77f   :  { %v741_v25 = vpop.permute.xlu0 %740 }
 0x780   :  { %1442 = vmatpush3.msra.mxu1 %v741_v25 }
 0x781   :  { %1451 = vmatprep.subr.mxu1 %v1634_v9 }
 0x786   :  { %v1547_v27 = vpop.eup %1546 }
 0x787   :  { %v739_v28 = vmul.f32 %v1547_v27, %v1545_v21 }
 0x789   :  { %1444 = vmatmul.mubr.msk.f32.vlgmr.msra.gmra.mrb[6].mxu1 %vm177_vm2, %v739_v28 }
 0x78a   :  { %1452 = vmatpush3.xpose.msk.msra.mxu1 %vm177_vm2, %v652_v3  ;;  %1453 = vmatprep.mubr.msk.f32.mxu1 %vm1633_vm1, %v1634_v9 }
 0x78b   :  { %1461 = vmatprep.subr.mxu1 %v1634_v9 }
 0x78d   :  { %1454 = vmatmul.mubr.msk.f32.vlgmr.msra.gmra.mrb[8].mxu1 %vm177_vm2, %v892_v26 }
 0x78e   :  { %1463 = vmatprep.mubr.msk.f32.mxu1 %vm1633_vm1, %v1634_v9  ;;  %1462 = vmatpush3.msra.mxu1 %v1051_v42 }
 0x78f   :  { %1508 = vmatprep.subr.bf16.mxu1 %v1632_v6 }
 0x85c   :  { %v812_v29 = vpop.f32.mrb[6].mxu1 }
 0x85d   :  { %v1445_v30 = vpop.f32.mrb[7].mxu1  ;;  %1449 = vmatmul.mubr.msk.f32.vlgmr.msra.gmra.mrb[10].mxu0 %vm177_vm2, %v812_v29 }
 0x85e   :  { %1457 = vmatpush3.msra.mxu0 %v741_v25  ;;  %1458 = vmatprep.mubr.msk.f32.mxu0 %vm1633_vm1, %v1634_v9 }
 0x85f   :  { %1502 = vmatprep.subr.bf16.mxu0 %v1632_v6 }
 0x860   :  { %v961_v31 = vpop.f32.mrb[8].mxu1 }
 0x861   :  { %v965_v32 = vmul.f32 0.35355338, %v961_v31  ;;  %v1455_v33 = vpop.f32.mrb[9].mxu1 }
 0x863   :  { %v966_v35 = vsel %vm1770_vm5, %v965_v32, -1e+30 }
 0x864   :  { %v967_v36 = vsel %vm177_vm2, %v966_v35, -inf }
 0x865   :  { %968 = vmax.xlane.f32.xlu1 %v967_v36 }
 0x8f2   :  { %v969_v37 = vpop.xlane.xlu1 %968 }
 0x8f3   :  { %v970_v38 = vsub.f32 %v966_v35, %v969_v37 }
 0x8f5   :  { %v971_v39 = vmul.f32 1.442695, %v970_v38 }
 0x8f7   :  { %1548 = vpow2.f32 %v971_v39 }
 0x901   :  { %v1549_v40 = vpop.eup %1548 }
 0x902   :  { %v973_v41 = vsel %vm177_vm2, %v1549_v40, 0.0 }
 0x903   :  { %974 = vadd.xlane.f32.xlu0 %v973_v41 }
 0x930   :  { %v886_v34 = vpop.f32.mrb[10].mxu0 }
 0x931   :  { %v890_v43 = vadd.f32 %v886_v34, %v646_v11  ;;  %v1450_v44 = vpop.f32.mrb[11].mxu0  ;;  %v1512_v11 = vpack.c.bf16 %v1234_v10, %v1233_v7 }
 0x990   :  { %v975_v45 = vpop.xlane.xlu0 %974 }
 0x991   :  { %1550 = vrcp.f32 %v975_v45 }
 0x99b   :  { %v1551_v46 = vpop.eup %1550 }
 0x99c   :  { %v977_v47 = vmul.f32 %v1551_v46, %v1549_v40 }
 0x99e   :  { %1459 = vmatmul.mubr.msk.f32.vlgmr.msra.gmra.mrb[12].mxu0 %vm177_vm2, %v977_v47 }
 0x99f   :  { %1474 = vmatprep.mubr.msk.f32.mxu0 %vm1633_vm1, %v1634_v9  ;;  %1504 = vmatpush3.bf16.msra.mxu0 %v1503_v58 }
 0x9a0   :  { %1505 = vmatprep.subr.bf16.mxu0 %v1632_v6 }
 0xa71   :  { %v1047_v48 = vpop.f32.mrb[12].mxu0 }
 0xa72   :  { %v1460_v49 = vpop.f32.mrb[13].mxu0  ;;  %1464 = vmatmul.mubr.msk.f32.vlgmr.msra.gmra.mrb[10].mxu1 %vm177_vm2, %v1047_v48 }
 0xa73   :  { %1493 = vmatprep.mubr.msk.f32.mxu1 %vm1633_vm1, %v1634_v9  ;;  %v1146_v9 = vld [vmem:[%s1916_s7 + $0x18] sm:$0xff]  ;;  %1510 = vmatpush3.bf16.msra.mxu1 %v1509_v8 }
 0xa74   :  { %1511 = vmatprep.subr.bf16.mxu1 %v1632_v6 }
 0xa77   :  { %1513 = vmatpush3.bf16.msra.mxu1 %v1512_v11 }
 0xa78   :  { %1514 = vmatprep.subr.bf16.mxu1 %v1632_v6 }
 0xa7b   :  { %1516 = vmatpush3.bf16.msra.mxu1 %v1515_v14 }
 0xa7c   :  { %1517 = vmatprep.subr.bf16.mxu1 %v1632_v6 }
 0xa7f   :  { %1519 = vmatpush3.bf16.msra.mxu1 %v1518_v17 }
 0xb45   :  { %v1121_v50 = vpop.f32.mrb[10].mxu1 }
 0xb46   :  { %v1125_v51 = vadd.f32 %v1121_v50, %v890_v43  ;;  %v1465_v52 = vpop.f32.mrb[11].mxu1 }
 0xb48   :  { %v1126_v53 = vadd.f32 %v1125_v51, %v1718_v0  ;;  %v1145_v0 = vld [vmem:[%s1916_s7 + $0x10] sm:$0xff] }
 0xb49   :  { %v1506_v59 = vpack.c.bf16 %v1146_v9, %v1145_v0 }
 0xb4a   :  { %v1127_v54 = vmul.f32 %v1126_v53, %v1126_v53 }
 0xb4b   :  { %1507 = vmatpush3.bf16.msra.mxu0 %v1506_v59 }
 0xb4c   :  { %v1128_v55 = vsel %vm59_vm0, %v1127_v54, 0.0 }
 0xb4d   :  { %1129 = vadd.xlane.f32.xlu0 %v1128_v55 }
 0xbda   :  { %v1130_v60 = vpop.xlane.xlu0 %1129 }
 0xbdb   :  { %v1131_v61 = vmul.f32 0.03125, %v1130_v60 }
 0xbdd   :  { %v1132_v62 = vadd.f32 1e-05, %v1131_v61 }
 0xbdf   :  { %1552 = vrsqrt.f32 %v1132_v62 }
 0xbe9   :  { %v1553_v63 = vpop.eup %1552 }
 0xbea   :  { %v1134_v2 = vmul.f32 %v1553_v63, %v1126_v53 }
 0xbec   :  { %v1142_v3 = vmul.f32 %v1349_v1, %v1134_v2 }
 0xbee   :  { %1475 = vmatmul.mubr.msk.f32.vlgmr.msra.gmra.mrb[14].mxu0 %vm59_vm0, %v1142_v3 }
 0xcc1   :  { %v1216_v18 = vpop.f32.mrb[14].mxu0 }
 0xcc2   :  { %1227 = vrot.lane.b32.xlu1 %v1216_v18, %s1635_s18  ;;  %v1476_v19 = vpop.f32.mrb[15].mxu0  ;;  %v1220_v20 = vsub.f32 0.0, %v1216_v18  ;;  %s1602_s18 = scalar_lea.vmem %s1322_s11, 128 }
 0xcc3   :  { %p1603_p2 = scmp.ne.s32.totalorder %s1322_s11, %s1602_s18  ;;  %p1608_p4 = scmp.lt.s32.totalorder %s1602_s18, %s1602_s18 }
 0xcc4   :  { %v1221_v21 = vmul.f32 1.442695, %v1220_v20 }
 0xcc5   :  { %p1609_p5 = por %p1608_p4, %p1607_p3 }
 0xcc6   :  { %1554 = vpow2.f32 %v1221_v21 }
 0xcc7   :  { %p1610_p6 = pnand %p1609_p5, %p1603_p2 }
 0xcd0   :  { %v1555_v22 = vpop.eup %1554 }
 0xcd1   :  { %v1223_v23 = vadd.f32 1.0, %v1555_v22 }
 0xcd3   :  { %1556 = vrcp.f32 %v1223_v23 }
 0xcdd   :  { %v1557_v24 = vpop.eup %1556 }
 0xcde   :  { %v1225_v25 = vmul.f32 %v1557_v24, %v1216_v18 }
 0xd34   :  { %v1228_v27 = vpop.permute.xlu1 %1227 }
 0xd35   :  { %v1230_v28 = vmul.f32 %v1228_v27, %v1225_v25 }
 0xd37   :  { %1494 = vmatmul.mubr.msk.f32.vlgmr.msra.gmra.mrb[12].mxu1 %vm1239_vm6, %v1230_v28 }
 0xe0a   :  { %v1309_v6 = vpop.f32.mrb[12].mxu1 }
 0xe0b   :  { %v1313_v26 = vadd.f32 %v1309_v6, %v1126_v53  ;;  %v1495_v29 = vpop.f32.mrb[13].mxu1 }
 0xe0d   :  { %1314 = vst.msk [vmem:[#allocation7] sm:$0xff] %vm59_vm0, %v1313_v26 }
 0xe0e   :  { %1613 = shalt.err (!%p1610_p6)
}
 0xe0f   :  { %s1614_s14 = scalar_lea.hbm %s1918_s9, 128 }
 0xe10   :  { %p1615_p7 = scmp.ne.s32.totalorder %s1918_s9, %s1614_s14  ;;  %p1618_p8 = scmp.lt.u32.totalorder %s1614_s14, %s1918_s9 }
 0xe12   :  { %p1620_p9 = pnand %p1618_p8, %p1615_p7 }
 0xe14   :  { %1623 = shalt.err (!%p1620_p9)
}
 0xe15   :  { %1324 = dma.vmem_to_hbm [thread:$0]  %s1322_s11, 128, %s1918_s9, [#allocation4]  }
 0xe16   :  { %1628 = dma.done.wait [#allocation4], 128  }
 0xe17   :  { %1629 = vsyncadd [#allocation4], 4294967168 }
 0xe18   :  { %1328 = vsyncpa [#allocation3], 1 }
 0xe19   :  { %1329 = vsyncpa [#allocation6], 1 }
 0xe1a   :  { %1330 = vsyncpa [#allocation4], 1 }

</bundles_post_ra>
